<compile_context>
chip_gen: v7x
topology: tpu7x:2x2x1
jax: 0.10.0
libtpu: 0.0.40
codegen_flags: <defaults>
</compile_context>

<pallas_src>
import functools

import jax
import jax.numpy as jnp
from jax import lax
from jax.experimental import pallas as pl
from jax.experimental.pallas import tpu as pltpu


# ---------------------------------------------------------------------------
# Recurrent kernel
# ---------------------------------------------------------------------------
def _gru_recurrence_kernel(gx_ref, wh_ref, bhn_ref, y_ref, hN_ref, h_sc,
                           *, split_batch):
    """Recurrent part of one GRU layer.

    Grid: (batch_blocks [parallel], time_blocks [arbitrary/sequential]).

    gx_ref : (T_BLK, B_BLK, 3H) bf16  precomputed x@W_i + (b_i, +b_hr/+b_hz folded)
    wh_ref : (H, 3H)            bf16  fused hidden weights [W_hr | W_hz | W_hn]
    bhn_ref: (1, H)             f32   hidden bias of the n gate (NOT foldable)
    y_ref  : (T_BLK, B_BLK, H)  bf16  per-step outputs
    hN_ref : (B_BLK, H)         f32   final hidden (written at last time block)
    h_sc   : (B_BLK, H)         f32   carried hidden state scratch
    """
    t_blk_id = pl.program_id(1)

    @pl.when(t_blk_id == 0)
    def _():
        h_sc[...] = jnp.zeros_like(h_sc)

    H = h_sc.shape[-1]
    t_steps = y_ref.shape[0]
    wh = wh_ref[...]          # (H, 3H) bf16, loaded once per time block
    bhn = bhn_ref[...]        # (1, H)  f32

    def gates(gx, gh, h):
        # PyTorch GRU gate equations (r, z, n); elementwise math in f32.
        r = jax.nn.sigmoid(gx[:, :H] + gh[:, :H])
        z = jax.nn.sigmoid(gx[:, H:2 * H] + gh[:, H:2 * H])
        n = jnp.tanh(gx[:, 2 * H:] + r * (gh[:, 2 * H:] + bhn))
        # h_new = (1-z)*n + z*h, rewritten with one fewer VPU op.
        return n + z * (h - n)

    if split_batch:
        half = h_sc.shape[0] // 2

        def step(i, h):
            gx = gx_ref[i].astype(jnp.float32)                      # (B, 3H)
            h0, h1 = h[:half], h[half:]
            # Two independent MXU passes; scheduler can hide half-0's EUP/VPU
            # gate math under half-1's matmul.
            gh0 = jnp.dot(h0.astype(jnp.bfloat16), wh,
                          preferred_element_type=jnp.float32)
            gh1 = jnp.dot(h1.astype(jnp.bfloat16), wh,
                          preferred_element_type=jnp.float32)
            hn0 = gates(gx[:half], gh0, h0)
            hn1 = gates(gx[half:], gh1, h1)
            h_new = jnp.concatenate([hn0, hn1], axis=0)
            y_ref[i] = h_new.astype(y_ref.dtype)
            return h_new
    else:
        def step(i, h):
            gx = gx_ref[i].astype(jnp.float32)                      # (B, 3H)
            gh = jnp.dot(h.astype(jnp.bfloat16), wh,
                         preferred_element_type=jnp.float32)        # (B, 3H)
            h_new = gates(gx, gh, h)
            y_ref[i] = h_new.astype(y_ref.dtype)
            return h_new

    # Partial unroll: keeps LLO scheduling visibility without blowing up vreg
    # pressure / spills for large time blocks.
    h_last = lax.fori_loop(0, t_steps, step, h_sc[...],
                           unroll=min(int(t_steps), 8))
    h_sc[...] = h_last

    @pl.when(t_blk_id == pl.num_programs(1) - 1)
    def _():
        hN_ref[...] = h_last.astype(hN_ref.dtype)


# ---------------------------------------------------------------------------
# Tiling / VMEM budgeting helpers (generation-aware)
# ---------------------------------------------------------------------------
def _vmem_capacity_bytes():
    try:
        return int(pltpu.get_tpu_info().vmem_capacity_bytes)
    except Exception:
        return 64 * 1024 * 1024  # conservative: v7x per-TensorCore VMEM


def _tile_bytes(t_blk, b_blk, H):
    return (2 * t_blk * b_blk * 3 * H * 2     # gx blocks (bf16, double-buffered)
            + 2 * t_blk * b_blk * H * 2       # Y blocks  (bf16, double-buffered)
            + 2 * H * 3 * H * 2               # wh (grid-invariant, 2 buffers)
            + 2 * H * 4                       # bhn
            + 2 * b_blk * H * 4               # final-h output block
            + b_blk * H * 4)                  # hidden-state scratch


def _pick_time_block(S, b_blk, H, budget_bytes, max_t_blk=64):
    best = 1
    for cand in range(1, min(S, max_t_blk) + 1):
        if S % cand == 0 and _tile_bytes(cand, b_blk, H) <= budget_bytes:
            best = cand
    return best


# ---------------------------------------------------------------------------
# One GRU layer
# ---------------------------------------------------------------------------
def gru_layer(x, wi, bi_fused, wh, bhn, *, t_blk=None, b_blk=None):
    """One GRU layer.

    x        : (S, B, E) f32 or bf16
    wi       : (E, 3H) bf16   fused input weights
    bi_fused : (3H,)   f32    [b_ir + b_hr | b_iz + b_hz | b_in]
    wh       : (H, 3H) bf16   fused hidden weights
    bhn      : (1, H)  f32    b_hn
    returns (Y: (S, B, H) bf16, h_last: (B, H) f32)
    """
    S, B, E = x.shape
    H = wh.shape[0]

    if b_blk is None:
        # Split the batch so v7x's second TensorCore has work, but only when
        # the halves stay sublane-aligned; otherwise keep the full batch
        # (maximizes MXU row fill on single-TC v5e/v6e).
        b_blk = B // 2 if (B >= 16 and (B // 2) % 8 == 0) else B
    assert B % b_blk == 0 and (b_blk == B or b_blk % 8 == 0)

    vmem_cap = _vmem_capacity_bytes()
    if t_blk is None:
        t_blk = _pick_time_block(S, b_blk, H, int(0.4 * vmem_cap))
    t_blk = min(t_blk, S)
    assert S % t_blk == 0, "seq_len must be divisible by the time block"

    tile_bytes = _tile_bytes(t_blk, b_blk, H)
    vmem_limit = min(int(0.6 * vmem_cap), max(32 << 20, tile_bytes + (8 << 20)))

    # Hoisted input projection: one large, fully parallel GEMM over all S*B
    # rows (bf16 operands, f32 accumulation), with the r/z hidden biases folded
    # into the bias epilogue.  Stored bf16 (dominant HBM stream).
    gx = (jnp.einsum("sbe,eg->sbg", x.astype(jnp.bfloat16), wi,
                     preferred_element_type=jnp.float32)
          + bi_fused).astype(jnp.bfloat16)                         # (S, B, 3H)

    # Interleave two batch sub-blocks inside each timestep only when the halves
    # stay sublane-aligned.
    split_batch = (b_blk >= 16) and (b_blk % 16 == 0)

    grid = (B // b_blk, S // t_blk)
    invariant = lambda shape: pl.BlockSpec(shape, lambda b, t: (0, 0))

    grid_spec = pltpu.PrefetchScalarGridSpec(
        num_scalar_prefetch=0,
        grid=grid,
        in_specs=[
            pl.BlockSpec((t_blk, b_blk, 3 * H), lambda b, t: (t, b, 0)),  # gx
            invariant((H, 3 * H)),                                        # W_h
            invariant((1, H)),                                            # b_hn
        ],
        out_specs=[
            pl.BlockSpec((t_blk, b_blk, H), lambda b, t: (t, b, 0)),      # Y
            pl.BlockSpec((b_blk, H), lambda b, t: (b, 0)),                # final h
        ],
        scratch_shapes=[pltpu.VMEM((b_blk, H), jnp.float32)],
    )

    y, h_last = pl.pallas_call(
        functools.partial(_gru_recurrence_kernel, split_batch=split_batch),
        out_shape=(jax.ShapeDtypeStruct((S, B, H), jnp.bfloat16),
                   jax.ShapeDtypeStruct((B, H), jnp.float32)),
        grid_spec=grid_spec,
        compiler_params=pltpu.CompilerParams(
            # Batch blocks are independent (megacore split on v7x); the time
            # axis carries the hidden state and must stay sequential.
            dimension_semantics=("parallel", "arbitrary"),
            vmem_limit_bytes=vmem_limit,
        ),
    )(gx, wh, bhn)
    return y, h_last


# ---------------------------------------------------------------------------
# Parameters & forward
# ---------------------------------------------------------------------------
def init_encoder_params(key, vocab_size, embed_size, num_hiddens, num_layers):
    """Deterministic synthetic parameters, PyTorch-style U(-1/sqrt(H), 1/sqrt(H)).

    Weights stored pre-fused / pre-transposed vs PyTorch's (3H, in):
      wi       : (in_feat, 3H) = [W_ir | W_iz | W_in]   bf16 (MXU operand)
      wh       : (H, 3H)       = [W_hr | W_hz | W_hn]   bf16 (MXU operand)
      bi_fused : (3H,) = [b_ir+b_hr | b_iz+b_hz | b_in] f32  (r/z hidden biases folded)
      bhn      : (1,H) = b_hn                           f32  (stays inside tanh per PyTorch)
    """
    params = {}
    key, k_emb = jax.random.split(key)
    params["embedding"] = jax.random.normal(k_emb, (vocab_size, embed_size),
                                            jnp.float32)

    bound = 1.0 / float(num_hiddens) ** 0.5
    Hn = num_hiddens
    layers = []
    for layer in range(num_layers):
        in_feat = embed_size if layer == 0 else num_hiddens
        key, *ks = jax.random.split(key, 5)
        u = lambda k, shape: jax.random.uniform(k, shape, jnp.float32, -bound, bound)
        bi = u(ks[2], (3 * Hn,))
        bh = u(ks[3], (3 * Hn,))
        bi_fused = bi + jnp.concatenate(
            [bh[:2 * Hn], jnp.zeros((Hn,), jnp.float32)])
        lp = dict(
            wi=u(ks[0], (in_feat, 3 * Hn)).astype(jnp.bfloat16),
            wh=u(ks[1], (Hn, 3 * Hn)).astype(jnp.bfloat16),
            bi_fused=bi_fused,
            bhn=bh[2 * Hn:].reshape(1, Hn),
        )
        layers.append(lp)
    params["layers"] = layers
    return params


def encoder_gru_forward(params, X, seq_len):
    """Mirrors EncoderGRU.forward: X (batch, seq_len) int -> (S, H)."""
    assert X.ndim == 2 and X.shape[1] == seq_len
    # Embedding gather produced directly time-major (no (B,S,E) transpose pass).
    # TODO(synk): the gather itself stays in XLA; fusing it into the layer-0
    # kernel would need scalar-prefetched token ids + a pl.Element row-gather spec.
    x = params["embedding"][X.T]                       # (S, B, E) f32

    h_finals = []
    for lp in params["layers"]:
        x, h_last = gru_layer(x, lp["wi"], lp["bi_fused"], lp["wh"], lp["bhn"])
        h_finals.append(h_last)
    S_out = x.astype(jnp.float32)                      # (seq_len, B, H)
    H_out = jnp.stack(h_finals, axis=0)                # (num_layers, B, H)
    return S_out, H_out


def _reference_forward(params, X, seq_len):
    """Pure-JAX reference of the same math (bf16 matmul operands & gx/Y storage,
    f32 gate math and carried hidden state)."""
    x = params["embedding"][X.T]
    h_finals = []
    for lp in params["layers"]:
        S, B, _ = x.shape
        H = lp["wh"].shape[0]
        gx = (jnp.einsum("sbe,eg->sbg", x.astype(jnp.bfloat16), lp["wi"],
                         preferred_element_type=jnp.float32)
              + lp["bi_fused"]).astype(jnp.bfloat16)
        h = jnp.zeros((B, H), jnp.float32)
        ys = []
        for t in range(S):
            g = gx[t].astype(jnp.float32)
            gh = jnp.dot(h.astype(jnp.bfloat16), lp["wh"],
                         preferred_element_type=jnp.float32)
            r = jax.nn.sigmoid(g[:, :H] + gh[:, :H])
            z = jax.nn.sigmoid(g[:, H:2 * H] + gh[:, H:2 * H])
            n = jnp.tanh(g[:, 2 * H:] + r * (gh[:, 2 * H:] + lp["bhn"]))
            h = n + z * (h - n)
            ys.append(h.astype(jnp.bfloat16))
        x = jnp.stack(ys, axis=0)
        h_finals.append(h)
    return x.astype(jnp.float32), jnp.stack(h_finals, axis=0)


if __name__ == "__main__":
    vocab_size, embed_size, num_hiddens, num_layers, seq_len = 50, 16, 32, 2, 8
    batch = 2

    key = jax.random.PRNGKey(0)
    key, k_tok = jax.random.split(key)
    params = init_encoder_params(key, vocab_size, embed_size, num_hiddens, num_layers)
    X = jax.random.randint(k_tok, (batch, seq_len), 0, vocab_size, dtype=jnp.int32)

    fwd = jax.jit(functools.partial(encoder_gru_forward, seq_len=seq_len))
    S_out, H_out = fwd(params, X)
    jax.block_until_ready((S_out, H_out))

    # Sanity check against a pure-JAX reference of the identical math.
    # Tolerance: gx/Y are stored in bf16 and Pallas/XLA may differ in MXU
    # accumulation order and EUP transcendental lowering, so ~1e-2, not bit-exact.
    S_ref, H_ref = _reference_forward(params, X, seq_len)
    assert S_out.shape == (seq_len, batch, num_hiddens)
    assert H_out.shape == (num_layers, batch, num_hiddens)
    assert jnp.allclose(S_out, S_ref, atol=1e-2, rtol=1e-2), \
        float(jnp.max(jnp.abs(S_out - S_ref)))
    assert jnp.allclose(H_out, H_ref, atol=1e-2, rtol=1e-2), \
        float(jnp.max(jnp.abs(H_out - H_ref)))

    print("KERNEL_OK")
</pallas_src>

<mosaic_0001>
module attributes {stable_mosaic.version = 11 : i64} {
  func.func @_gru_recurrence_kernel(%arg0: i32, %arg1: i32, %arg2: memref<8x2x96xbf16, #tpu.memory_space<vmem>>, %arg3: memref<32x96xbf16, #tpu.memory_space<vmem>>, %arg4: memref<1x32xf32, #tpu.memory_space<vmem>>, %arg5: memref<8x2x32xbf16, #tpu.memory_space<vmem>>, %arg6: memref<2x32xf32, #tpu.memory_space<vmem>>, %arg7: memref<2x32xf32, #tpu.memory_space<vmem>>) attributes {dimension_semantics = [#tpu.dimension_semantics<parallel>, #tpu.dimension_semantics<arbitrary>], iteration_bounds = array<i64: 1, 1>, scalar_prefetch = 0 : i64, scratch_operands = 1 : i64, tpu.core_type = #tpu.core_type<tc>, window_params = [{transform_indices = @transform_0, window_bounds = array<i64: 8, 2, 96>}, {pipeline_mode = #tpu.pipeline_mode<synchronous>, transform_indices = @transform_1, window_bounds = array<i64: 32, 96>}, {pipeline_mode = #tpu.pipeline_mode<synchronous>, transform_indices = @transform_2, window_bounds = array<i64: 1, 32>}, {transform_indices = @transform_3, window_bounds = array<i64: 8, 2, 32>}, {transform_indices = @transform_4, window_bounds = array<i64: 2, 32>}]} {
    %c0_i32 = arith.constant 0 : i32
    %0 = arith.cmpi eq, %arg1, %c0_i32 : i32
    %1 = arith.extui %0 : i1 to i32
    %c0_i32_0 = arith.constant 0 : i32
    %2 = arith.cmpi ne, %1, %c0_i32_0 : i32
    scf.if %2 {
      %cst_66 = arith.constant 0.000000e+00 : f32
      %306 = vector.broadcast %cst_66 : f32 to vector<2x32xf32>
      %c0_67 = arith.constant 0 : index
      %c0_68 = arith.constant 0 : index
      %307 = vector.load %arg7[%c0_67, %c0_68] : memref<2x32xf32, #tpu.memory_space<vmem>>, vector<2x32xf32>
      tpu.vector_store %arg7[%c0_67, %c0_68], %306 {strides = array<i32>} : memref<2x32xf32, #tpu.memory_space<vmem>>, vector<2x32xf32>,
    } else {
    }
    %c0 = arith.constant 0 : index
    %c0_1 = arith.constant 0 : index
    %3 = vector.load %arg3[%c0, %c0_1] : memref<32x96xbf16, #tpu.memory_space<vmem>>, vector<32x96xbf16>
    %c0_2 = arith.constant 0 : index
    %c0_3 = arith.constant 0 : index
    %4 = vector.load %arg4[%c0_2, %c0_3] : memref<1x32xf32, #tpu.memory_space<vmem>>, vector<1x32xf32>
    %c0_4 = arith.constant 0 : index
    %c0_5 = arith.constant 0 : index
    %5 = vector.load %arg7[%c0_4, %c0_5] : memref<2x32xf32, #tpu.memory_space<vmem>>, vector<2x32xf32>
    %c0_i32_6 = arith.constant 0 : i32
    %6 = arith.index_cast %c0_i32_6 : i32 to index
    %c0_7 = arith.constant 0 : index
    %c0_8 = arith.constant 0 : index
    %7 = vector.load %arg2[%6, %c0_7, %c0_8] : memref<8x2x96xbf16, #tpu.memory_space<vmem>>, vector<1x2x96xbf16>
    %8 = vector.shape_cast %7 : vector<1x2x96xbf16> to vector<2x96xbf16>
    %9 = arith.extf %8 : vector<2x96xbf16> to vector<2x96xf32>
    %10 = arith.truncf %5 : vector<2x32xf32> to vector<2x32xbf16>
    %cst = arith.constant dense<0.000000e+00> : vector<2x96xf32>
    %11 = tpu.matmul %10, %3, %cst {dimension_numbers = #tpu.dot_dimension_numbers<[1], [0], [0], [1], [0, 0, 1, 1], [], []>} : vector<2x32xbf16>, vector<32x96xbf16>, vector<2x96xf32> -> vector<2x96xf32>
    %12 = vector.extract_strided_slice %9 {offsets = [0, 0], sizes = [2, 32], strides = [1, 1]} : vector<2x96xf32> to vector<2x32xf32>
    %13 = vector.extract_strided_slice %11 {offsets = [0, 0], sizes = [2, 32], strides = [1, 1]} : vector<2x96xf32> to vector<2x32xf32>
    %14 = arith.addf %12, %13 : vector<2x32xf32>
    %15 = arith.negf %14 : vector<2x32xf32>
    %16 = math.exp %15 : vector<2x32xf32>
    %cst_9 = arith.constant 1.000000e+00 : f32
    %17 = vector.broadcast %cst_9 : f32 to vector<2x32xf32>
    %18 = arith.addf %17, %16 : vector<2x32xf32>
    %19 = arith.divf %17, %18 : vector<2x32xf32>
    %20 = vector.extract_strided_slice %9 {offsets = [0, 32], sizes = [2, 32], strides = [1, 1]} : vector<2x96xf32> to vector<2x32xf32>
    %21 = vector.extract_strided_slice %11 {offsets = [0, 32], sizes = [2, 32], strides = [1, 1]} : vector<2x96xf32> to vector<2x32xf32>
    %22 = arith.addf %20, %21 : vector<2x32xf32>
    %23 = arith.negf %22 : vector<2x32xf32>
    %24 = math.exp %23 : vector<2x32xf32>
    %cst_10 = arith.constant 1.000000e+00 : f32
    %25 = vector.broadcast %cst_10 : f32 to vector<2x32xf32>
    %26 = arith.addf %25, %24 : vector<2x32xf32>
    %27 = arith.divf %25, %26 : vector<2x32xf32>
    %28 = vector.extract_strided_slice %9 {offsets = [0, 64], sizes = [2, 32], strides = [1, 1]} : vector<2x96xf32> to vector<2x32xf32>
    %29 = vector.extract_strided_slice %11 {offsets = [0, 64], sizes = [2, 32], strides = [1, 1]} : vector<2x96xf32> to vector<2x32xf32>
    %30 = vector.broadcast %4 : vector<1x32xf32> to vector<2x32xf32>
    %31 = arith.addf %29, %30 : vector<2x32xf32>
    %32 = arith.mulf %19, %31 : vector<2x32xf32>
    %33 = arith.addf %28, %32 : vector<2x32xf32>
    %34 = math.tanh %33 : vector<2x32xf32>
    %35 = arith.subf %5, %34 : vector<2x32xf32>
    %36 = arith.mulf %27, %35 : vector<2x32xf32>
    %37 = arith.addf %34, %36 : vector<2x32xf32>
    %38 = arith.truncf %37 : vector<2x32xf32> to vector<2x32xbf16>
    %39 = arith.index_cast %c0_i32_6 : i32 to index
    %c0_11 = arith.constant 0 : index
    %c0_12 = arith.constant 0 : index
    %40 = vector.load %arg5[%39, %c0_11, %c0_12] : memref<8x2x32xbf16, #tpu.memory_space<vmem>>, vector<1x2x32xbf16>
    %41 = vector.shape_cast %40 : vector<1x2x32xbf16> to vector<2x32xbf16>
    %42 = vector.shape_cast %38 : vector<2x32xbf16> to vector<1x2x32xbf16>
    tpu.vector_store %arg5[%39, %c0_11, %c0_12], %42 {strides = array<i32>} : memref<8x2x32xbf16, #tpu.memory_space<vmem>>, vector<1x2x32xbf16>,
    %c1_i32 = arith.constant 1 : i32
    %43 = arith.index_cast %c1_i32 : i32 to index
    %c0_13 = arith.constant 0 : index
    %c0_14 = arith.constant 0 : index
    %44 = vector.load %arg2[%43, %c0_13, %c0_14] : memref<8x2x96xbf16, #tpu.memory_space<vmem>>, vector<1x2x96xbf16>
    %45 = vector.shape_cast %44 : vector<1x2x96xbf16> to vector<2x96xbf16>
    %46 = arith.extf %45 : vector<2x96xbf16> to vector<2x96xf32>
    %47 = arith.truncf %37 : vector<2x32xf32> to vector<2x32xbf16>
    %cst_15 = arith.constant dense<0.000000e+00> : vector<2x96xf32>
    %48 = tpu.matmul %47, %3, %cst_15 {dimension_numbers = #tpu.dot_dimension_numbers<[1], [0], [0], [1], [0, 0, 1, 1], [], []>} : vector<2x32xbf16>, vector<32x96xbf16>, vector<2x96xf32> -> vector<2x96xf32>
    %49 = vector.extract_strided_slice %46 {offsets = [0, 0], sizes = [2, 32], strides = [1, 1]} : vector<2x96xf32> to vector<2x32xf32>
    %50 = vector.extract_strided_slice %48 {offsets = [0, 0], sizes = [2, 32], strides = [1, 1]} : vector<2x96xf32> to vector<2x32xf32>
    %51 = arith.addf %49, %50 : vector<2x32xf32>
    %52 = arith.negf %51 : vector<2x32xf32>
    %53 = math.exp %52 : vector<2x32xf32>
    %cst_16 = arith.constant 1.000000e+00 : f32
    %54 = vector.broadcast %cst_16 : f32 to vector<2x32xf32>
    %55 = arith.addf %54, %53 : vector<2x32xf32>
    %56 = arith.divf %54, %55 : vector<2x32xf32>
    %57 = vector.extract_strided_slice %46 {offsets = [0, 32], sizes = [2, 32], strides = [1, 1]} : vector<2x96xf32> to vector<2x32xf32>
    %58 = vector.extract_strided_slice %48 {offsets = [0, 32], sizes = [2, 32], strides = [1, 1]} : vector<2x96xf32> to vector<2x32xf32>
    %59 = arith.addf %57, %58 : vector<2x32xf32>
    %60 = arith.negf %59 : vector<2x32xf32>
    %61 = math.exp %60 : vector<2x32xf32>
    %cst_17 = arith.constant 1.000000e+00 : f32
    %62 = vector.broadcast %cst_17 : f32 to vector<2x32xf32>
    %63 = arith.addf %62, %61 : vector<2x32xf32>
    %64 = arith.divf %62, %63 : vector<2x32xf32>
    %65 = vector.extract_strided_slice %46 {offsets = [0, 64], sizes = [2, 32], strides = [1, 1]} : vector<2x96xf32> to vector<2x32xf32>
    %66 = vector.extract_strided_slice %48 {offsets = [0, 64], sizes = [2, 32], strides = [1, 1]} : vector<2x96xf32> to vector<2x32xf32>
    %67 = vector.broadcast %4 : vector<1x32xf32> to vector<2x32xf32>
    %68 = arith.addf %66, %67 : vector<2x32xf32>
    %69 = arith.mulf %56, %68 : vector<2x32xf32>
    %70 = arith.addf %65, %69 : vector<2x32xf32>
    %71 = math.tanh %70 : vector<2x32xf32>
    %72 = arith.subf %37, %71 : vector<2x32xf32>
    %73 = arith.mulf %64, %72 : vector<2x32xf32>
    %74 = arith.addf %71, %73 : vector<2x32xf32>
    %75 = arith.truncf %74 : vector<2x32xf32> to vector<2x32xbf16>
    %76 = arith.index_cast %c1_i32 : i32 to index
    %c0_18 = arith.constant 0 : index
    %c0_19 = arith.constant 0 : index
    %77 = vector.load %arg5[%76, %c0_18, %c0_19] : memref<8x2x32xbf16, #tpu.memory_space<vmem>>, vector<1x2x32xbf16>
    %78 = vector.shape_cast %77 : vector<1x2x32xbf16> to vector<2x32xbf16>
    %79 = vector.shape_cast %75 : vector<2x32xbf16> to vector<1x2x32xbf16>
    tpu.vector_store %arg5[%76, %c0_18, %c0_19], %79 {strides = array<i32>} : memref<8x2x32xbf16, #tpu.memory_space<vmem>>, vector<1x2x32xbf16>,
    %c2_i32 = arith.constant 2 : i32
    %80 = arith.index_cast %c2_i32 : i32 to index
    %c0_20 = arith.constant 0 : index
    %c0_21 = arith.constant 0 : index
    %81 = vector.load %arg2[%80, %c0_20, %c0_21] : memref<8x2x96xbf16, #tpu.memory_space<vmem>>, vector<1x2x96xbf16>
    %82 = vector.shape_cast %81 : vector<1x2x96xbf16> to vector<2x96xbf16>
    %83 = arith.extf %82 : vector<2x96xbf16> to vector<2x96xf32>
    %84 = arith.truncf %74 : vector<2x32xf32> to vector<2x32xbf16>
    %cst_22 = arith.constant dense<0.000000e+00> : vector<2x96xf32>
    %85 = tpu.matmul %84, %3, %cst_22 {dimension_numbers = #tpu.dot_dimension_numbers<[1], [0], [0], [1], [0, 0, 1, 1], [], []>} : vector<2x32xbf16>, vector<32x96xbf16>, vector<2x96xf32> -> vector<2x96xf32>
    %86 = vector.extract_strided_slice %83 {offsets = [0, 0], sizes = [2, 32], strides = [1, 1]} : vector<2x96xf32> to vector<2x32xf32>
    %87 = vector.extract_strided_slice %85 {offsets = [0, 0], sizes = [2, 32], strides = [1, 1]} : vector<2x96xf32> to vector<2x32xf32>
    %88 = arith.addf %86, %87 : vector<2x32xf32>
    %89 = arith.negf %88 : vector<2x32xf32>
    %90 = math.exp %89 : vector<2x32xf32>
    %cst_23 = arith.constant 1.000000e+00 : f32
    %91 = vector.broadcast %cst_23 : f32 to vector<2x32xf32>
    %92 = arith.addf %91, %90 : vector<2x32xf32>
    %93 = arith.divf %91, %92 : vector<2x32xf32>
    %94 = vector.extract_strided_slice %83 {offsets = [0, 32], sizes = [2, 32], strides = [1, 1]} : vector<2x96xf32> to vector<2x32xf32>
    %95 = vector.extract_strided_slice %85 {offsets = [0, 32], sizes = [2, 32], strides = [1, 1]} : vector<2x96xf32> to vector<2x32xf32>
    %96 = arith.addf %94, %95 : vector<2x32xf32>
    %97 = arith.negf %96 : vector<2x32xf32>
    %98 = math.exp %97 : vector<2x32xf32>
    %cst_24 = arith.constant 1.000000e+00 : f32
    %99 = vector.broadcast %cst_24 : f32 to vector<2x32xf32>
    %100 = arith.addf %99, %98 : vector<2x32xf32>
    %101 = arith.divf %99, %100 : vector<2x32xf32>
    %102 = vector.extract_strided_slice %83 {offsets = [0, 64], sizes = [2, 32], strides = [1, 1]} : vector<2x96xf32> to vector<2x32xf32>
    %103 = vector.extract_strided_slice %85 {offsets = [0, 64], sizes = [2, 32], strides = [1, 1]} : vector<2x96xf32> to vector<2x32xf32>
    %104 = vector.broadcast %4 : vector<1x32xf32> to vector<2x32xf32>
    %105 = arith.addf %103, %104 : vector<2x32xf32>
    %106 = arith.mulf %93, %105 : vector<2x32xf32>
    %107 = arith.addf %102, %106 : vector<2x32xf32>
    %108 = math.tanh %107 : vector<2x32xf32>
    %109 = arith.subf %74, %108 : vector<2x32xf32>
    %110 = arith.mulf %101, %109 : vector<2x32xf32>
    %111 = arith.addf %108, %110 : vector<2x32xf32>
    %112 = arith.truncf %111 : vector<2x32xf32> to vector<2x32xbf16>
    %113 = arith.index_cast %c2_i32 : i32 to index
    %c0_25 = arith.constant 0 : index
    %c0_26 = arith.constant 0 : index
    %114 = vector.load %arg5[%113, %c0_25, %c0_26] : memref<8x2x32xbf16, #tpu.memory_space<vmem>>, vector<1x2x32xbf16>
    %115 = vector.shape_cast %114 : vector<1x2x32xbf16> to vector<2x32xbf16>
    %116 = vector.shape_cast %112 : vector<2x32xbf16> to vector<1x2x32xbf16>
    tpu.vector_store %arg5[%113, %c0_25, %c0_26], %116 {strides = array<i32>} : memref<8x2x32xbf16, #tpu.memory_space<vmem>>, vector<1x2x32xbf16>,
    %c3_i32 = arith.constant 3 : i32
    %117 = arith.index_cast %c3_i32 : i32 to index
    %c0_27 = arith.constant 0 : index
    %c0_28 = arith.constant 0 : index
    %118 = vector.load %arg2[%117, %c0_27, %c0_28] : memref<8x2x96xbf16, #tpu.memory_space<vmem>>, vector<1x2x96xbf16>
    %119 = vector.shape_cast %118 : vector<1x2x96xbf16> to vector<2x96xbf16>
    %120 = arith.extf %119 : vector<2x96xbf16> to vector<2x96xf32>
    %121 = arith.truncf %111 : vector<2x32xf32> to vector<2x32xbf16>
    %cst_29 = arith.constant dense<0.000000e+00> : vector<2x96xf32>
    %122 = tpu.matmul %121, %3, %cst_29 {dimension_numbers = #tpu.dot_dimension_numbers<[1], [0], [0], [1], [0, 0, 1, 1], [], []>} : vector<2x32xbf16>, vector<32x96xbf16>, vector<2x96xf32> -> vector<2x96xf32>
    %123 = vector.extract_strided_slice %120 {offsets = [0, 0], sizes = [2, 32], strides = [1, 1]} : vector<2x96xf32> to vector<2x32xf32>
    %124 = vector.extract_strided_slice %122 {offsets = [0, 0], sizes = [2, 32], strides = [1, 1]} : vector<2x96xf32> to vector<2x32xf32>
    %125 = arith.addf %123, %124 : vector<2x32xf32>
    %126 = arith.negf %125 : vector<2x32xf32>
    %127 = math.exp %126 : vector<2x32xf32>
    %cst_30 = arith.constant 1.000000e+00 : f32
    %128 = vector.broadcast %cst_30 : f32 to vector<2x32xf32>
    %129 = arith.addf %128, %127 : vector<2x32xf32>
    %130 = arith.divf %128, %129 : vector<2x32xf32>
    %131 = vector.extract_strided_slice %120 {offsets = [0, 32], sizes = [2, 32], strides = [1, 1]} : vector<2x96xf32> to vector<2x32xf32>
    %132 = vector.extract_strided_slice %122 {offsets = [0, 32], sizes = [2, 32], strides = [1, 1]} : vector<2x96xf32> to vector<2x32xf32>
    %133 = arith.addf %131, %132 : vector<2x32xf32>
    %134 = arith.negf %133 : vector<2x32xf32>
    %135 = math.exp %134 : vector<2x32xf32>
    %cst_31 = arith.constant 1.000000e+00 : f32
    %136 = vector.broadcast %cst_31 : f32 to vector<2x32xf32>
    %137 = arith.addf %136, %135 : vector<2x32xf32>
    %138 = arith.divf %136, %137 : vector<2x32xf32>
    %139 = vector.extract_strided_slice %120 {offsets = [0, 64], sizes = [2, 32], strides = [1, 1]} : vector<2x96xf32> to vector<2x32xf32>
    %140 = vector.extract_strided_slice %122 {offsets = [0, 64], sizes = [2, 32], strides = [1, 1]} : vector<2x96xf32> to vector<2x32xf32>
    %141 = vector.broadcast %4 : vector<1x32xf32> to vector<2x32xf32>
    %142 = arith.addf %140, %141 : vector<2x32xf32>
    %143 = arith.mulf %130, %142 : vector<2x32xf32>
    %144 = arith.addf %139, %143 : vector<2x32xf32>
    %145 = math.tanh %144 : vector<2x32xf32>
    %146 = arith.subf %111, %145 : vector<2x32xf32>
    %147 = arith.mulf %138, %146 : vector<2x32xf32>
    %148 = arith.addf %145, %147 : vector<2x32xf32>
    %149 = arith.truncf %148 : vector<2x32xf32> to vector<2x32xbf16>
    %150 = arith.index_cast %c3_i32 : i32 to index
    %c0_32 = arith.constant 0 : index
    %c0_33 = arith.constant 0 : index
    %151 = vector.load %arg5[%150, %c0_32, %c0_33] : memref<8x2x32xbf16, #tpu.memory_space<vmem>>, vector<1x2x32xbf16>
    %152 = vector.shape_cast %151 : vector<1x2x32xbf16> to vector<2x32xbf16>
    %153 = vector.shape_cast %149 : vector<2x32xbf16> to vector<1x2x32xbf16>
    tpu.vector_store %arg5[%150, %c0_32, %c0_33], %153 {strides = array<i32>} : memref<8x2x32xbf16, #tpu.memory_space<vmem>>, vector<1x2x32xbf16>,
    %c4_i32 = arith.constant 4 : i32
    %154 = arith.index_cast %c4_i32 : i32 to index
    %c0_34 = arith.constant 0 : index
    %c0_35 = arith.constant 0 : index
    %155 = vector.load %arg2[%154, %c0_34, %c0_35] : memref<8x2x96xbf16, #tpu.memory_space<vmem>>, vector<1x2x96xbf16>
    %156 = vector.shape_cast %155 : vector<1x2x96xbf16> to vector<2x96xbf16>
    %157 = arith.extf %156 : vector<2x96xbf16> to vector<2x96xf32>
    %158 = arith.truncf %148 : vector<2x32xf32> to vector<2x32xbf16>
    %cst_36 = arith.constant dense<0.000000e+00> : vector<2x96xf32>
    %159 = tpu.matmul %158, %3, %cst_36 {dimension_numbers = #tpu.dot_dimension_numbers<[1], [0], [0], [1], [0, 0, 1, 1], [], []>} : vector<2x32xbf16>, vector<32x96xbf16>, vector<2x96xf32> -> vector<2x96xf32>
    %160 = vector.extract_strided_slice %157 {offsets = [0, 0], sizes = [2, 32], strides = [1, 1]} : vector<2x96xf32> to vector<2x32xf32>
    %161 = vector.extract_strided_slice %159 {offsets = [0, 0], sizes = [2, 32], strides = [1, 1]} : vector<2x96xf32> to vector<2x32xf32>
    %162 = arith.addf %160, %161 : vector<2x32xf32>
    %163 = arith.negf %162 : vector<2x32xf32>
    %164 = math.exp %163 : vector<2x32xf32>
    %cst_37 = arith.constant 1.000000e+00 : f32
    %165 = vector.broadcast %cst_37 : f32 to vector<2x32xf32>
    %166 = arith.addf %165, %164 : vector<2x32xf32>
    %167 = arith.divf %165, %166 : vector<2x32xf32>
    %168 = vector.extract_strided_slice %157 {offsets = [0, 32], sizes = [2, 32], strides = [1, 1]} : vector<2x96xf32> to vector<2x32xf32>
    %169 = vector.extract_strided_slice %159 {offsets = [0, 32], sizes = [2, 32], strides = [1, 1]} : vector<2x96xf32> to vector<2x32xf32>
    %170 = arith.addf %168, %169 : vector<2x32xf32>
    %171 = arith.negf %170 : vector<2x32xf32>
    %172 = math.exp %171 : vector<2x32xf32>
    %cst_38 = arith.constant 1.000000e+00 : f32
    %173 = vector.broadcast %cst_38 : f32 to vector<2x32xf32>
    %174 = arith.addf %173, %172 : vector<2x32xf32>
    %175 = arith.divf %173, %174 : vector<2x32xf32>
    %176 = vector.extract_strided_slice %157 {offsets = [0, 64], sizes = [2, 32], strides = [1, 1]} : vector<2x96xf32> to vector<2x32xf32>
    %177 = vector.extract_strided_slice %159 {offsets = [0, 64], sizes = [2, 32], strides = [1, 1]} : vector<2x96xf32> to vector<2x32xf32>
    %178 = vector.broadcast %4 : vector<1x32xf32> to vector<2x32xf32>
    %179 = arith.addf %177, %178 : vector<2x32xf32>
    %180 = arith.mulf %167, %179 : vector<2x32xf32>
    %181 = arith.addf %176, %180 : vector<2x32xf32>
    %182 = math.tanh %181 : vector<2x32xf32>
    %183 = arith.subf %148, %182 : vector<2x32xf32>
    %184 = arith.mulf %175, %183 : vector<2x32xf32>
    %185 = arith.addf %182, %184 : vector<2x32xf32>
    %186 = arith.truncf %185 : vector<2x32xf32> to vector<2x32xbf16>
    %187 = arith.index_cast %c4_i32 : i32 to index
    %c0_39 = arith.constant 0 : index
    %c0_40 = arith.constant 0 : index
    %188 = vector.load %arg5[%187, %c0_39, %c0_40] : memref<8x2x32xbf16, #tpu.memory_space<vmem>>, vector<1x2x32xbf16>
    %189 = vector.shape_cast %188 : vector<1x2x32xbf16> to vector<2x32xbf16>
    %190 = vector.shape_cast %186 : vector<2x32xbf16> to vector<1x2x32xbf16>
    tpu.vector_store %arg5[%187, %c0_39, %c0_40], %190 {strides = array<i32>} : memref<8x2x32xbf16, #tpu.memory_space<vmem>>, vector<1x2x32xbf16>,
    %c5_i32 = arith.constant 5 : i32
    %191 = arith.index_cast %c5_i32 : i32 to index
    %c0_41 = arith.constant 0 : index
    %c0_42 = arith.constant 0 : index
    %192 = vector.load %arg2[%191, %c0_41, %c0_42] : memref<8x2x96xbf16, #tpu.memory_space<vmem>>, vector<1x2x96xbf16>
    %193 = vector.shape_cast %192 : vector<1x2x96xbf16> to vector<2x96xbf16>
    %194 = arith.extf %193 : vector<2x96xbf16> to vector<2x96xf32>
    %195 = arith.truncf %185 : vector<2x32xf32> to vector<2x32xbf16>
    %cst_43 = arith.constant dense<0.000000e+00> : vector<2x96xf32>
    %196 = tpu.matmul %195, %3, %cst_43 {dimension_numbers = #tpu.dot_dimension_numbers<[1], [0], [0], [1], [0, 0, 1, 1], [], []>} : vector<2x32xbf16>, vector<32x96xbf16>, vector<2x96xf32> -> vector<2x96xf32>
    %197 = vector.extract_strided_slice %194 {offsets = [0, 0], sizes = [2, 32], strides = [1, 1]} : vector<2x96xf32> to vector<2x32xf32>
    %198 = vector.extract_strided_slice %196 {offsets = [0, 0], sizes = [2, 32], strides = [1, 1]} : vector<2x96xf32> to vector<2x32xf32>
    %199 = arith.addf %197, %198 : vector<2x32xf32>
    %200 = arith.negf %199 : vector<2x32xf32>
    %201 = math.exp %200 : vector<2x32xf32>
    %cst_44 = arith.constant 1.000000e+00 : f32
    %202 = vector.broadcast %cst_44 : f32 to vector<2x32xf32>
    %203 = arith.addf %202, %201 : vector<2x32xf32>
    %204 = arith.divf %202, %203 : vector<2x32xf32>
    %205 = vector.extract_strided_slice %194 {offsets = [0, 32], sizes = [2, 32], strides = [1, 1]} : vector<2x96xf32> to vector<2x32xf32>
    %206 = vector.extract_strided_slice %196 {offsets = [0, 32], sizes = [2, 32], strides = [1, 1]} : vector<2x96xf32> to vector<2x32xf32>
    %207 = arith.addf %205, %206 : vector<2x32xf32>
    %208 = arith.negf %207 : vector<2x32xf32>
    %209 = math.exp %208 : vector<2x32xf32>
    %cst_45 = arith.constant 1.000000e+00 : f32
    %210 = vector.broadcast %cst_45 : f32 to vector<2x32xf32>
    %211 = arith.addf %210, %209 : vector<2x32xf32>
    %212 = arith.divf %210, %211 : vector<2x32xf32>
    %213 = vector.extract_strided_slice %194 {offsets = [0, 64], sizes = [2, 32], strides = [1, 1]} : vector<2x96xf32> to vector<2x32xf32>
    %214 = vector.extract_strided_slice %196 {offsets = [0, 64], sizes = [2, 32], strides = [1, 1]} : vector<2x96xf32> to vector<2x32xf32>
    %215 = vector.broadcast %4 : vector<1x32xf32> to vector<2x32xf32>
    %216 = arith.addf %214, %215 : vector<2x32xf32>
    %217 = arith.mulf %204, %216 : vector<2x32xf32>
    %218 = arith.addf %213, %217 : vector<2x32xf32>
    %219 = math.tanh %218 : vector<2x32xf32>
    %220 = arith.subf %185, %219 : vector<2x32xf32>
    %221 = arith.mulf %212, %220 : vector<2x32xf32>
    %222 = arith.addf %219, %221 : vector<2x32xf32>
    %223 = arith.truncf %222 : vector<2x32xf32> to vector<2x32xbf16>
    %224 = arith.index_cast %c5_i32 : i32 to index
    %c0_46 = arith.constant 0 : index
    %c0_47 = arith.constant 0 : index
    %225 = vector.load %arg5[%224, %c0_46, %c0_47] : memref<8x2x32xbf16, #tpu.memory_space<vmem>>, vector<1x2x32xbf16>
    %226 = vector.shape_cast %225 : vector<1x2x32xbf16> to vector<2x32xbf16>
    %227 = vector.shape_cast %223 : vector<2x32xbf16> to vector<1x2x32xbf16>
    tpu.vector_store %arg5[%224, %c0_46, %c0_47], %227 {strides = array<i32>} : memref<8x2x32xbf16, #tpu.memory_space<vmem>>, vector<1x2x32xbf16>,
    %c6_i32 = arith.constant 6 : i32
    %228 = arith.index_cast %c6_i32 : i32 to index
    %c0_48 = arith.constant 0 : index
    %c0_49 = arith.constant 0 : index
    %229 = vector.load %arg2[%228, %c0_48, %c0_49] : memref<8x2x96xbf16, #tpu.memory_space<vmem>>, vector<1x2x96xbf16>
    %230 = vector.shape_cast %229 : vector<1x2x96xbf16> to vector<2x96xbf16>
    %231 = arith.extf %230 : vector<2x96xbf16> to vector<2x96xf32>
    %232 = arith.truncf %222 : vector<2x32xf32> to vector<2x32xbf16>
    %cst_50 = arith.constant dense<0.000000e+00> : vector<2x96xf32>
    %233 = tpu.matmul %232, %3, %cst_50 {dimension_numbers = #tpu.dot_dimension_numbers<[1], [0], [0], [1], [0, 0, 1, 1], [], []>} : vector<2x32xbf16>, vector<32x96xbf16>, vector<2x96xf32> -> vector<2x96xf32>
    %234 = vector.extract_strided_slice %231 {offsets = [0, 0], sizes = [2, 32], strides = [1, 1]} : vector<2x96xf32> to vector<2x32xf32>
    %235 = vector.extract_strided_slice %233 {offsets = [0, 0], sizes = [2, 32], strides = [1, 1]} : vector<2x96xf32> to vector<2x32xf32>
    %236 = arith.addf %234, %235 : vector<2x32xf32>
    %237 = arith.negf %236 : vector<2x32xf32>
    %238 = math.exp %237 : vector<2x32xf32>
    %cst_51 = arith.constant 1.000000e+00 : f32
    %239 = vector.broadcast %cst_51 : f32 to vector<2x32xf32>
    %240 = arith.addf %239, %238 : vector<2x32xf32>
    %241 = arith.divf %239, %240 : vector<2x32xf32>
    %242 = vector.extract_strided_slice %231 {offsets = [0, 32], sizes = [2, 32], strides = [1, 1]} : vector<2x96xf32> to vector<2x32xf32>
    %243 = vector.extract_strided_slice %233 {offsets = [0, 32], sizes = [2, 32], strides = [1, 1]} : vector<2x96xf32> to vector<2x32xf32>
    %244 = arith.addf %242, %243 : vector<2x32xf32>
    %245 = arith.negf %244 : vector<2x32xf32>
    %246 = math.exp %245 : vector<2x32xf32>
    %cst_52 = arith.constant 1.000000e+00 : f32
    %247 = vector.broadcast %cst_52 : f32 to vector<2x32xf32>
    %248 = arith.addf %247, %246 : vector<2x32xf32>
    %249 = arith.divf %247, %248 : vector<2x32xf32>
    %250 = vector.extract_strided_slice %231 {offsets = [0, 64], sizes = [2, 32], strides = [1, 1]} : vector<2x96xf32> to vector<2x32xf32>
    %251 = vector.extract_strided_slice %233 {offsets = [0, 64], sizes = [2, 32], strides = [1, 1]} : vector<2x96xf32> to vector<2x32xf32>
    %252 = vector.broadcast %4 : vector<1x32xf32> to vector<2x32xf32>
    %253 = arith.addf %251, %252 : vector<2x32xf32>
    %254 = arith.mulf %241, %253 : vector<2x32xf32>
    %255 = arith.addf %250, %254 : vector<2x32xf32>
    %256 = math.tanh %255 : vector<2x32xf32>
    %257 = arith.subf %222, %256 : vector<2x32xf32>
    %258 = arith.mulf %249, %257 : vector<2x32xf32>
    %259 = arith.addf %256, %258 : vector<2x32xf32>
    %260 = arith.truncf %259 : vector<2x32xf32> to vector<2x32xbf16>
    %261 = arith.index_cast %c6_i32 : i32 to index
    %c0_53 = arith.constant 0 : index
    %c0_54 = arith.constant 0 : index
    %262 = vector.load %arg5[%261, %c0_53, %c0_54] : memref<8x2x32xbf16, #tpu.memory_space<vmem>>, vector<1x2x32xbf16>
    %263 = vector.shape_cast %262 : vector<1x2x32xbf16> to vector<2x32xbf16>
    %264 = vector.shape_cast %260 : vector<2x32xbf16> to vector<1x2x32xbf16>
    tpu.vector_store %arg5[%261, %c0_53, %c0_54], %264 {strides = array<i32>} : memref<8x2x32xbf16, #tpu.memory_space<vmem>>, vector<1x2x32xbf16>,
    %c7_i32 = arith.constant 7 : i32
    %265 = arith.index_cast %c7_i32 : i32 to index
    %c0_55 = arith.constant 0 : index
    %c0_56 = arith.constant 0 : index
    %266 = vector.load %arg2[%265, %c0_55, %c0_56] : memref<8x2x96xbf16, #tpu.memory_space<vmem>>, vector<1x2x96xbf16>
    %267 = vector.shape_cast %266 : vector<1x2x96xbf16> to vector<2x96xbf16>
    %268 = arith.extf %267 : vector<2x96xbf16> to vector<2x96xf32>
    %269 = arith.truncf %259 : vector<2x32xf32> to vector<2x32xbf16>
    %cst_57 = arith.constant dense<0.000000e+00> : vector<2x96xf32>
    %270 = tpu.matmul %269, %3, %cst_57 {dimension_numbers = #tpu.dot_dimension_numbers<[1], [0], [0], [1], [0, 0, 1, 1], [], []>} : vector<2x32xbf16>, vector<32x96xbf16>, vector<2x96xf32> -> vector<2x96xf32>
    %271 = vector.extract_strided_slice %268 {offsets = [0, 0], sizes = [2, 32], strides = [1, 1]} : vector<2x96xf32> to vector<2x32xf32>
    %272 = vector.extract_strided_slice %270 {offsets = [0, 0], sizes = [2, 32], strides = [1, 1]} : vector<2x96xf32> to vector<2x32xf32>
    %273 = arith.addf %271, %272 : vector<2x32xf32>
    %274 = arith.negf %273 : vector<2x32xf32>
    %275 = math.exp %274 : vector<2x32xf32>
    %cst_58 = arith.constant 1.000000e+00 : f32
    %276 = vector.broadcast %cst_58 : f32 to vector<2x32xf32>
    %277 = arith.addf %276, %275 : vector<2x32xf32>
    %278 = arith.divf %276, %277 : vector<2x32xf32>
    %279 = vector.extract_strided_slice %268 {offsets = [0, 32], sizes = [2, 32], strides = [1, 1]} : vector<2x96xf32> to vector<2x32xf32>
    %280 = vector.extract_strided_slice %270 {offsets = [0, 32], sizes = [2, 32], strides = [1, 1]} : vector<2x96xf32> to vector<2x32xf32>
    %281 = arith.addf %279, %280 : vector<2x32xf32>
    %282 = arith.negf %281 : vector<2x32xf32>
    %283 = math.exp %282 : vector<2x32xf32>
    %cst_59 = arith.constant 1.000000e+00 : f32
    %284 = vector.broadcast %cst_59 : f32 to vector<2x32xf32>
    %285 = arith.addf %284, %283 : vector<2x32xf32>
    %286 = arith.divf %284, %285 : vector<2x32xf32>
    %287 = vector.extract_strided_slice %268 {offsets = [0, 64], sizes = [2, 32], strides = [1, 1]} : vector<2x96xf32> to vector<2x32xf32>
    %288 = vector.extract_strided_slice %270 {offsets = [0, 64], sizes = [2, 32], strides = [1, 1]} : vector<2x96xf32> to vector<2x32xf32>
    %289 = vector.broadcast %4 : vector<1x32xf32> to vector<2x32xf32>
    %290 = arith.addf %288, %289 : vector<2x32xf32>
    %291 = arith.mulf %278, %290 : vector<2x32xf32>
    %292 = arith.addf %287, %291 : vector<2x32xf32>
    %293 = math.tanh %292 : vector<2x32xf32>
    %294 = arith.subf %259, %293 : vector<2x32xf32>
    %295 = arith.mulf %286, %294 : vector<2x32xf32>
    %296 = arith.addf %293, %295 : vector<2x32xf32>
    %297 = arith.truncf %296 : vector<2x32xf32> to vector<2x32xbf16>
    %298 = arith.index_cast %c7_i32 : i32 to index
    %c0_60 = arith.constant 0 : index
    %c0_61 = arith.constant 0 : index
    %299 = vector.load %arg5[%298, %c0_60, %c0_61] : memref<8x2x32xbf16, #tpu.memory_space<vmem>>, vector<1x2x32xbf16>
    %300 = vector.shape_cast %299 : vector<1x2x32xbf16> to vector<2x32xbf16>
    %301 = vector.shape_cast %297 : vector<2x32xbf16> to vector<1x2x32xbf16>
    tpu.vector_store %arg5[%298, %c0_60, %c0_61], %301 {strides = array<i32>} : memref<8x2x32xbf16, #tpu.memory_space<vmem>>, vector<1x2x32xbf16>,
    %c8_i32 = arith.constant 8 : i32
    %c0_62 = arith.constant 0 : index
    %c0_63 = arith.constant 0 : index
    %302 = vector.load %arg7[%c0_62, %c0_63] : memref<2x32xf32, #tpu.memory_space<vmem>>, vector<2x32xf32>
    tpu.vector_store %arg7[%c0_62, %c0_63], %296 {strides = array<i32>} : memref<2x32xf32, #tpu.memory_space<vmem>>, vector<2x32xf32>,
    %c0_i32_64 = arith.constant 0 : i32
    %303 = arith.cmpi eq, %arg1, %c0_i32_64 : i32
    %304 = arith.extui %303 : i1 to i32
    %c0_i32_65 = arith.constant 0 : i32
    %305 = arith.cmpi ne, %304, %c0_i32_65 : i32
    scf.if %305 {
      %c0_66 = arith.constant 0 : index
      %c0_67 = arith.constant 0 : index
      %306 = vector.load %arg6[%c0_66, %c0_67] : memref<2x32xf32, #tpu.memory_space<vmem>>, vector<2x32xf32>
      tpu.vector_store %arg6[%c0_66, %c0_67], %296 {strides = array<i32>} : memref<2x32xf32, #tpu.memory_space<vmem>>, vector<2x32xf32>,
    } else {
    }
    return
  }
  func.func @transform_0(%arg0: i32, %arg1: i32) -> (i32, i32, i32) {
    %c0_i32 = arith.constant 0 : i32
    %c0_i32_0 = arith.constant 0 : i32
    return %arg1, %arg0, %c0_i32 : i32, i32, i32
  }
  func.func @transform_1(%arg0: i32, %arg1: i32) -> (i32, i32) {
    %c0_i32 = arith.constant 0 : i32
    %c0_i32_0 = arith.constant 0 : i32
    %c0_i32_1 = arith.constant 0 : i32
    return %c0_i32, %c0_i32_0 : i32, i32
  }
  func.func @transform_2(%arg0: i32, %arg1: i32) -> (i32, i32) {
    %c0_i32 = arith.constant 0 : i32
    %c0_i32_0 = arith.constant 0 : i32
    %c0_i32_1 = arith.constant 0 : i32
    return %c0_i32, %c0_i32_0 : i32, i32
  }
  func.func @transform_3(%arg0: i32, %arg1: i32) -> (i32, i32, i32) {
    %c0_i32 = arith.constant 0 : i32
    %c0_i32_0 = arith.constant 0 : i32
    return %arg1, %arg0, %c0_i32 : i32, i32, i32
  }
  func.func @transform_4(%arg0: i32, %arg1: i32) -> (i32, i32) {
    %c0_i32 = arith.constant 0 : i32
    %c0_i32_0 = arith.constant 0 : i32
    return %arg0, %c0_i32 : i32, i32
  }
}

</mosaic_0001>

<bundles_post_ra>
// kernel: encoder_gru_forward.2
= control target key start
LH: loop header
LB: loop body
LE: loop exit
PB: predicated region body
PF: predicated region fallthrough
CT: control target
= control target key end

     0   :  { %vm21_vm0 = vcmask 254976   ;;  %v1117_v0 = vmov 0.0   ;;  %vm1118_vm1 = vmmov 0   ;;  %s1119_s21 = smov 64   ;;  %vm44_vm2 = vcmask 261120   ;;  %s1121_s22 = smov 32   ;;  %s1382_s1 = inlined_call_operand.vmem [shape: bf16[32,96], index: 1, kind: input, shape index: {}]   ;;  %s1383_s2 = inlined_call_operand.vmem [shape: f32[1,32], index: 2, kind: input, shape index: {}]   ;;  %s1384_s0 = inlined_call_operand.vmem [shape: bf16[8,2,96], index: 0, kind: input, shape index: {}]   ;;  %s1385_s3 = inlined_call_operand.vmem [shape: bf16[8,2,32], index: 3, kind: output, shape index: {0}]   ;;  %s1386_s4 = inlined_call_operand.vmem [shape: f32[2,32], index: 4, kind: output, shape index: {1}]  }
   0x1   :  { %996 = vmatprep.subr.bf16.mxu0 %v1117_v0  ;;  %v1153_v1 = vld [vmem:[%s1382_s1] sm:$0xff]   ;;  %1000 = vmatprep.mubr.msk.bf16.mxu0 %vm1118_vm1, %v1117_v0  ;;  %22 = vst.msk [vmem:[#allocation2] sm:$0x3] %vm21_vm0, %v1117_v0  ;;  %v1166_v2 = vld [vmem:[%s1382_s1 + $0x8] sm:$0xff]   ;;  %v1120_v6 = vmov 1983009808   ;;  %v108_v8 = vlaneseq }
   0x2   :  { %1004 = vmatprep.subr.bf16.mxu1 %v1117_v0  ;;  %1008 = vmatprep.mubr.msk.bf16.mxu1 %vm1118_vm1, %v1117_v0  ;;  %v943_v3 = vld [vmem:[%s1383_s2] ss:$0 sm:$0xff]  ;;  %v106_v7 = vunpack.c.l.s4 %v1120_v6  ;;  %v944_v47 = vld [vmem:[%s1384_s0 + $0x1] sm:$0x1]  ;;  %s1122_s25 = smov 96   ;;  %vm170_vm3 = vcmask 253952  }
   0x3   :  { %997 = vmatpush3.bf16.msra.mxu0 %v1153_v1  ;;  %1005 = vmatpush3.bf16.msra.mxu1 %v1153_v1  ;;  %v1186_v10 = vshrl.u32 %v108_v8, 7  ;;  %v29_v19 = vld [vmem:[%s1384_s0] sm:$0x1]  ;;  %v174_v48 = vunpack.c.l.bf16 %v944_v47 }
   0x4   :  { %998 = vmatprep.subr.bf16.mxu0 %v1117_v0  ;;  %100 = vrot.lane.b32.xlu0 %v943_v3, %s1119_s21  ;;  %v107_v9 = vunpack.c.0.s8 %v106_v7  ;;  %v30_v20 = vunpack.c.l.bf16 %v29_v19 }
   0x5   :  { %1006 = vmatprep.subr.bf16.mxu1 %v1117_v0 }
   0x6   :  { %v1191_v12 = vsub.s32 %v107_v9, %v1186_v10 }
   0x7   :  { %999 = vmatpush3.bf16.msra.mxu0 %v1166_v2  ;;  %1007 = vmatpush3.bf16.msra.mxu1 %v1166_v2 }
   0x8   :  { %v28_v4 = vld [vmem:[#allocation2] sm:$0x3]  ;;  %1012 = vmatprep.subr.bf16.mxu0 %v1117_v0  ;;  %1020 = vmatprep.subr.bf16.mxu1 %v1117_v0 }
   0x9   :  { %v31_v5 = vpack.c.bf16 %v28_v4, %v28_v4 }
   0xb   :  { %1001 = vmatmul.mubr.msk.bf16.vlgmr.msra.gmra.mrb[0].mxu0 %vm44_vm2, %v31_v5 }
   0xc   :  { %1013 = vmatpush3.bf16.msra.mxu0 %v1153_v1  ;;  %1016 = vmatprep.mubr.msk.bf16.mxu0 %vm1118_vm1, %v1117_v0 }
   0xd   :  { %1014 = vmatprep.subr.bf16.mxu0 %v1117_v0 }
  0x10   :  { %1015 = vmatpush3.bf16.msra.mxu0 %v1166_v2 }
  0x11   :  { %1028 = vmatprep.subr.bf16.mxu0 %v1117_v0 }
  0x76   :  { %v1188_v11 = vpop.permute.xlu0 %100 }
  0xde   :  { %v82_v13 = vpop.f32.mrb[0].mxu0 }
  0xdf   :  { %v103_v14 = vadd.f32 %v1188_v11, %v82_v13  ;;  %v1002_v15 = vpop.f32.mrb[1].mxu0  ;;  %v88_v21 = vadd.f32 %v82_v13, %v30_v20 }
  0xe0   :  { %v85_v16 = vpop.f32.mrb[2].mxu0 }
  0xe1   :  { %v111_v17 = vrot.slane %v103_v14, %v1191_v12  ;;  %v1003_v18 = vpop.f32.mrb[3].mxu0  ;;  %v942_v22 = vmul.f32 -1.442695, %v88_v21  ;;  %v948_v14 = vld [vmem:[%s1384_s0 + $0x2] sm:$0x1] }
  0xe2   :  { %v280_v15 = vunpack.c.l.bf16 %v948_v14 }
  0xe3   :  { %112 = vrot.lane.b32.xlu0 %v111_v17, %s1119_s21  ;;  %1069 = vpow2.f32 %v942_v22 }
  0xed   :  { %v1070_v23 = vpop.eup %1069 }
  0xee   :  { %v92_v24 = vadd.f32 1.0, %v1070_v23 }
  0xf0   :  { %1071 = vrcp.f32 %v92_v24 }
  0xfa   :  { %v1072_v25 = vpop.eup %1071 }
 0x155   :  { %v113_v26 = vpop.permute.xlu0 %112 }
 0x156   :  { %v115_v27 = vmul.f32 %v1072_v25, %v113_v26 }
 0x158   :  { %117 = vrot.lane.b32.xlu1 %v115_v27, %s1119_s21 }
 0x1ca   :  { %v118_v28 = vpop.permute.xlu1 %117 }
 0x1cb   :  { %v120_v29 = vadd.f32 %v118_v28, %v30_v20 }
 0x1cd   :  { %1073 = vtanh.f32 %v120_v29 }
 0x1d7   :  { %v1074_v30 = vpop.eup %1073 }
 0x1d8   :  { %v129_v31 = vrot.slane %v1074_v30, %v1191_v12 }
 0x1da   :  { %130 = vrot.lane.b32.xlu1 %v129_v31, %s1119_s21 }
 0x24c   :  { %v131_v32 = vpop.permute.xlu1 %130 }
 0x24d   :  { %v133_v33 = vsub.f32 %v28_v4, %v131_v32 }
 0x24f   :  { %v141_v34 = vrot.slane %v133_v33, %v1191_v12 }
 0x251   :  { %142 = vrot.lane.b32.xlu0 %v141_v34, %s1121_s22 }
 0x2c3   :  { %v143_v35 = vpop.permute.xlu0 %142 }
 0x2c4   :  { %v145_v36 = vmul.f32 %v1072_v25, %v143_v35 }
 0x2c6   :  { %147 = vrot.lane.b32.xlu1 %v145_v36, %s1121_s22 }
 0x338   :  { %v148_v37 = vpop.permute.xlu1 %147 }
 0x339   :  { %v150_v38 = vadd.f32 %v1074_v30, %v148_v37 }
 0x33b   :  { %v1205_v39 = vpack.c.bf16 %v150_v38, %v150_v38 }
 0x33d   :  { %175 = vrot.lane.b32.xlu0 %v1205_v39, %s1119_s21 }
 0x3af   :  { %v176_v40 = vpop.permute.xlu0 %175 }
 0x3b0   :  { %1009 = vmatmul.mubr.msk.bf16.vlgmr.msra.gmra.mrb[0].mxu1 %vm44_vm2, %v176_v40  ;;  %v952_v40 = vld [vmem:[%s1384_s0 + $0x3] sm:$0x1] }
 0x3b1   :  { %1021 = vmatpush3.bf16.msra.mxu1 %v1153_v1  ;;  %1024 = vmatprep.mubr.msk.bf16.mxu1 %vm1118_vm1, %v1117_v0 }
 0x3b2   :  { %1022 = vmatprep.subr.bf16.mxu1 %v1117_v0 }
 0x3b5   :  { %1023 = vmatpush3.bf16.msra.mxu1 %v1166_v2 }
 0x3b6   :  { %1036 = vmatprep.subr.bf16.mxu1 %v1117_v0 }
 0x483   :  { %v214_v41 = vpop.f32.mrb[0].mxu1 }
 0x484   :  { %v227_v42 = vadd.f32 %v214_v41, %v1188_v11  ;;  %v1010_v43 = vpop.f32.mrb[1].mxu1  ;;  %v220_v49 = vadd.f32 %v214_v41, %v174_v48  ;;  %v386_v41 = vunpack.c.l.bf16 %v952_v40 }
 0x485   :  { %v217_v44 = vpop.f32.mrb[2].mxu1 }
 0x486   :  { %v235_v45 = vrot.slane %v227_v42, %v1191_v12  ;;  %v1011_v46 = vpop.f32.mrb[3].mxu1  ;;  %v946_v50 = vmul.f32 -1.442695, %v220_v49 }
 0x488   :  { %236 = vrot.lane.b32.xlu1 %v235_v45, %s1119_s21  ;;  %1075 = vpow2.f32 %v946_v50 }
 0x492   :  { %v1076_v51 = vpop.eup %1075 }
 0x493   :  { %v224_v52 = vadd.f32 1.0, %v1076_v51 }
 0x495   :  { %1077 = vrcp.f32 %v224_v52 }
 0x49f   :  { %v1078_v53 = vpop.eup %1077 }
 0x4fa   :  { %v237_v54 = vpop.permute.xlu1 %236 }
 0x4fb   :  { %v239_v55 = vmul.f32 %v1078_v53, %v237_v54 }
 0x4fd   :  { %241 = vrot.lane.b32.xlu0 %v239_v55, %s1119_s21 }
 0x56f   :  { %v242_v56 = vpop.permute.xlu0 %241 }
 0x570   :  { %v244_v57 = vadd.f32 %v242_v56, %v174_v48 }
 0x572   :  { %1079 = vtanh.f32 %v244_v57 }
 0x57c   :  { %v1080_v58 = vpop.eup %1079 }
 0x57d   :  { %v246_v59 = vsub.f32 %v150_v38, %v1080_v58 }
 0x57f   :  { %248 = vrot.lane.b32.xlu1 %v246_v59, %s1122_s25 }
 0x5f1   :  { %v249_v60 = vpop.permute.xlu1 %248 }
 0x5f2   :  { %v251_v61 = vmul.f32 %v1078_v53, %v249_v60 }
 0x5f4   :  { %253 = vrot.lane.b32.xlu0 %v251_v61, %s1121_s22 }
 0x666   :  { %v254_v62 = vpop.permute.xlu0 %253 }
 0x667   :  { %v256_v63 = vadd.f32 %v1080_v58, %v254_v62 }
 0x669   :  { %v1225_v3 = vpack.c.bf16 %v256_v63, %v256_v63 }
 0x66b   :  { %281 = vrot.lane.b32.xlu1 %v1225_v3, %s1119_s21 }
 0x6dd   :  { %v282_v4 = vpop.permute.xlu1 %281 }
 0x6de   :  { %1017 = vmatmul.mubr.msk.bf16.vlgmr.msra.gmra.mrb[4].mxu0 %vm44_vm2, %v282_v4 }
 0x6df   :  { %1029 = vmatpush3.bf16.msra.mxu0 %v1153_v1  ;;  %1032 = vmatprep.mubr.msk.bf16.mxu0 %vm1118_vm1, %v1117_v0 }
 0x6e0   :  { %1030 = vmatprep.subr.bf16.mxu0 %v1117_v0 }
 0x6e3   :  { %1031 = vmatpush3.bf16.msra.mxu0 %v1166_v2 }
 0x6e4   :  { %1044 = vmatprep.subr.bf16.mxu0 %v1117_v0 }
 0x7b1   :  { %v320_v5 = vpop.f32.mrb[4].mxu0 }
 0x7b2   :  { %v333_v6 = vadd.f32 %v320_v5, %v1188_v11  ;;  %v1018_v7 = vpop.f32.mrb[5].mxu0  ;;  %v326_v16 = vadd.f32 %v320_v5, %v280_v15  ;;  %v956_v5 = vld [vmem:[%s1384_s0 + $0x4] sm:$0x1] }
 0x7b3   :  { %v323_v8 = vpop.f32.mrb[6].mxu0 }
 0x7b4   :  { %v341_v9 = vrot.slane %v333_v6, %v1191_v12  ;;  %v1019_v13 = vpop.f32.mrb[7].mxu0  ;;  %v950_v17 = vmul.f32 -1.442695, %v326_v16  ;;  %v492_v6 = vunpack.c.l.bf16 %v956_v5 }
 0x7b6   :  { %342 = vrot.lane.b32.xlu0 %v341_v9, %s1119_s21  ;;  %1081 = vpow2.f32 %v950_v17 }
 0x7c0   :  { %v1082_v18 = vpop.eup %1081 }
 0x7c1   :  { %v330_v19 = vadd.f32 1.0, %v1082_v18 }
 0x7c3   :  { %1083 = vrcp.f32 %v330_v19 }
 0x7cd   :  { %v1084_v20 = vpop.eup %1083 }
 0x828   :  { %v343_v21 = vpop.permute.xlu0 %342 }
 0x829   :  { %v345_v22 = vmul.f32 %v1084_v20, %v343_v21 }
 0x82b   :  { %347 = vrot.lane.b32.xlu1 %v345_v22, %s1119_s21 }
 0x89d   :  { %v348_v23 = vpop.permute.xlu1 %347 }
 0x89e   :  { %v350_v24 = vadd.f32 %v348_v23, %v280_v15 }
 0x8a0   :  { %1085 = vtanh.f32 %v350_v24 }
 0x8aa   :  { %v1086_v25 = vpop.eup %1085 }
 0x8ab   :  { %v352_v26 = vsub.f32 %v256_v63, %v1086_v25 }
 0x8ad   :  { %354 = vrot.lane.b32.xlu0 %v352_v26, %s1122_s25 }
 0x91f   :  { %v355_v27 = vpop.permute.xlu0 %354 }
 0x920   :  { %v357_v28 = vmul.f32 %v1084_v20, %v355_v27 }
 0x922   :  { %359 = vrot.lane.b32.xlu1 %v357_v28, %s1121_s22 }
 0x994   :  { %v360_v29 = vpop.permute.xlu1 %359 }
 0x995   :  { %v362_v30 = vadd.f32 %v1086_v25, %v360_v29 }
 0x997   :  { %v1245_v31 = vpack.c.bf16 %v362_v30, %v362_v30 }
 0x999   :  { %387 = vrot.lane.b32.xlu0 %v1245_v31, %s1119_s21 }
 0xa0b   :  { %v388_v32 = vpop.permute.xlu0 %387 }
 0xa0c   :  { %1025 = vmatmul.mubr.msk.bf16.vlgmr.msra.gmra.mrb[4].mxu1 %vm44_vm2, %v388_v32 }
 0xa0d   :  { %1037 = vmatpush3.bf16.msra.mxu1 %v1153_v1  ;;  %1040 = vmatprep.mubr.msk.bf16.mxu1 %vm1118_vm1, %v1117_v0 }
 0xa0e   :  { %1038 = vmatprep.subr.bf16.mxu1 %v1117_v0 }
 0xa11   :  { %1039 = vmatpush3.bf16.msra.mxu1 %v1166_v2 }
 0xa12   :  { %1052 = vmatprep.subr.bf16.mxu1 %v1117_v0 }
 0xadf   :  { %v426_v33 = vpop.f32.mrb[4].mxu1 }
 0xae0   :  { %v439_v34 = vadd.f32 %v426_v33, %v1188_v11  ;;  %v1026_v35 = vpop.f32.mrb[5].mxu1  ;;  %v432_v42 = vadd.f32 %v426_v33, %v386_v41 }
 0xae1   :  { %v429_v36 = vpop.f32.mrb[6].mxu1 }
 0xae2   :  { %v447_v37 = vrot.slane %v439_v34, %v1191_v12  ;;  %v1027_v38 = vpop.f32.mrb[7].mxu1  ;;  %v954_v43 = vmul.f32 -1.442695, %v432_v42 }
 0xae4   :  { %448 = vrot.lane.b32.xlu1 %v447_v37, %s1119_s21  ;;  %1087 = vpow2.f32 %v954_v43 }
 0xaee   :  { %v1088_v44 = vpop.eup %1087 }
 0xaef   :  { %v436_v45 = vadd.f32 1.0, %v1088_v44 }
 0xaf1   :  { %1089 = vrcp.f32 %v436_v45 }
 0xafb   :  { %v1090_v46 = vpop.eup %1089 }
 0xb56   :  { %v449_v47 = vpop.permute.xlu1 %448 }
 0xb57   :  { %v451_v48 = vmul.f32 %v1090_v46, %v449_v47 }
 0xb59   :  { %453 = vrot.lane.b32.xlu0 %v451_v48, %s1119_s21 }
 0xbcb   :  { %v454_v49 = vpop.permute.xlu0 %453 }
 0xbcc   :  { %v456_v50 = vadd.f32 %v454_v49, %v386_v41 }
 0xbce   :  { %1091 = vtanh.f32 %v456_v50 }
 0xbd8   :  { %v1092_v51 = vpop.eup %1091 }
 0xbd9   :  { %v458_v52 = vsub.f32 %v362_v30, %v1092_v51 }
 0xbdb   :  { %460 = vrot.lane.b32.xlu1 %v458_v52, %s1122_s25 }
 0xc4d   :  { %v461_v53 = vpop.permute.xlu1 %460 }
 0xc4e   :  { %v463_v54 = vmul.f32 %v1090_v46, %v461_v53 }
 0xc50   :  { %465 = vrot.lane.b32.xlu0 %v463_v54, %s1121_s22 }
 0xcc2   :  { %v466_v55 = vpop.permute.xlu0 %465 }
 0xcc3   :  { %v468_v56 = vadd.f32 %v1092_v51, %v466_v55 }
 0xcc5   :  { %v1265_v57 = vpack.c.bf16 %v468_v56, %v468_v56 }
 0xcc7   :  { %493 = vrot.lane.b32.xlu1 %v1265_v57, %s1119_s21 }
 0xd39   :  { %v494_v58 = vpop.permute.xlu1 %493 }
 0xd3a   :  { %1033 = vmatmul.mubr.msk.bf16.vlgmr.msra.gmra.mrb[8].mxu0 %vm44_vm2, %v494_v58  ;;  %v964_v58 = vld [vmem:[%s1384_s0 + $0x6] sm:$0x1] }
 0xd3b   :  { %1045 = vmatpush3.bf16.msra.mxu0 %v1153_v1  ;;  %1048 = vmatprep.mubr.msk.bf16.mxu0 %vm1118_vm1, %v1117_v0 }
 0xd3c   :  { %1046 = vmatprep.subr.bf16.mxu0 %v1117_v0 }
 0xd3f   :  { %1047 = vmatpush3.bf16.msra.mxu0 %v1166_v2 }
 0xe0d   :  { %v532_v59 = vpop.f32.mrb[8].mxu0 }
 0xe0e   :  { %v545_v60 = vadd.f32 %v532_v59, %v1188_v11  ;;  %v1034_v61 = vpop.f32.mrb[9].mxu0  ;;  %v538_v7 = vadd.f32 %v532_v59, %v492_v6  ;;  %v704_v59 = vunpack.c.l.bf16 %v964_v58 }
 0xe0f   :  { %v535_v62 = vpop.f32.mrb[10].mxu0 }
 0xe10   :  { %v553_v63 = vrot.slane %v545_v60, %v1191_v12  ;;  %v1035_v4 = vpop.f32.mrb[11].mxu0  ;;  %v958_v8 = vmul.f32 -1.442695, %v538_v7 }
 0xe12   :  { %554 = vrot.lane.b32.xlu0 %v553_v63, %s1119_s21  ;;  %1093 = vpow2.f32 %v958_v8 }
 0xe1c   :  { %v1094_v9 = vpop.eup %1093 }
 0xe1d   :  { %v542_v13 = vadd.f32 1.0, %v1094_v9 }
 0xe1f   :  { %1095 = vrcp.f32 %v542_v13 }
 0xe29   :  { %v1096_v14 = vpop.eup %1095 }
 0xe84   :  { %v555_v15 = vpop.permute.xlu0 %554 }
 0xe85   :  { %v557_v16 = vmul.f32 %v1096_v14, %v555_v15 }
 0xe87   :  { %559 = vrot.lane.b32.xlu1 %v557_v16, %s1119_s21 }
 0xef9   :  { %v560_v17 = vpop.permute.xlu1 %559 }
 0xefa   :  { %v562_v18 = vadd.f32 %v560_v17, %v492_v6 }
 0xefc   :  { %1097 = vtanh.f32 %v562_v18 }
 0xf06   :  { %v1098_v19 = vpop.eup %1097 }
 0xf07   :  { %v564_v20 = vsub.f32 %v468_v56, %v1098_v19 }
 0xf09   :  { %566 = vrot.lane.b32.xlu0 %v564_v20, %s1122_s25 }
 0xf7b   :  { %v567_v21 = vpop.permute.xlu0 %566 }
 0xf7c   :  { %v569_v22 = vmul.f32 %v1096_v14, %v567_v21 }
 0xf7e   :  { %571 = vrot.lane.b32.xlu1 %v569_v22, %s1121_s22 }
 0xff0   :  { %v572_v23 = vpop.permute.xlu1 %571 }
 0xff1   :  { %v574_v24 = vadd.f32 %v1098_v19, %v572_v23 }
 0xff3   :  { %v1284_v25 = vpack.c.bf16 %v574_v24, %v574_v24 }
 0xff5   :  { %599 = vrot.lane.b32.xlu0 %v1284_v25, %s1119_s21 }
0x1067   :  { %v600_v26 = vpop.permute.xlu0 %599 }
0x1068   :  { %1041 = vmatmul.mubr.msk.bf16.vlgmr.msra.gmra.mrb[8].mxu1 %vm44_vm2, %v600_v26 }
0x1069   :  { %1053 = vmatpush3.bf16.msra.mxu1 %v1153_v1  ;;  %1056 = vmatprep.mubr.msk.bf16.mxu1 %vm1118_vm1, %v1117_v0  ;;  %v960_v1 = vld [vmem:[%s1384_s0 + $0x5] sm:$0x1] }
0x106a   :  { %1054 = vmatprep.subr.bf16.mxu1 %v1117_v0  ;;  %v598_v34 = vunpack.c.l.bf16 %v960_v1 }
0x106d   :  { %1055 = vmatpush3.bf16.msra.mxu1 %v1166_v2 }
0x113b   :  { %v638_v27 = vpop.f32.mrb[8].mxu1 }
0x113c   :  { %v651_v28 = vadd.f32 %v638_v27, %v1188_v11  ;;  %v1042_v29 = vpop.f32.mrb[9].mxu1  ;;  %v644_v35 = vadd.f32 %v638_v27, %v598_v34  ;;  %v968_v27 = vld [vmem:[%s1384_s0 + $0x7] sm:$0x1] }
0x113d   :  { %v641_v30 = vpop.f32.mrb[10].mxu1 }
0x113e   :  { %v659_v32 = vrot.slane %v651_v28, %v1191_v12  ;;  %v1043_v33 = vpop.f32.mrb[11].mxu1  ;;  %v962_v36 = vmul.f32 -1.442695, %v644_v35  ;;  %v810_v28 = vunpack.c.l.bf16 %v968_v27 }
0x1140   :  { %660 = vrot.lane.b32.xlu1 %v659_v32, %s1119_s21  ;;  %1099 = vpow2.f32 %v962_v36 }
0x114a   :  { %v1100_v0 = vpop.eup %1099 }
0x114b   :  { %v648_v2 = vadd.f32 1.0, %v1100_v0  ;;  %v1123_v0 = vmov 1966171168  }
0x114d   :  { %1101 = vrcp.f32 %v648_v2  ;;  %v154_v2 = vunpack.c.l.s4 %v1123_v0 }
0x1157   :  { %v1102_v37 = vpop.eup %1101 }
0x11b2   :  { %v661_v38 = vpop.permute.xlu1 %660 }
0x11b3   :  { %v663_v40 = vmul.f32 %v1102_v37, %v661_v38 }
0x11b5   :  { %665 = vrot.lane.b32.xlu0 %v663_v40, %s1119_s21 }
0x1227   :  { %v666_v41 = vpop.permute.xlu0 %665 }
0x1228   :  { %v668_v42 = vadd.f32 %v666_v41, %v598_v34 }
0x122a   :  { %1103 = vtanh.f32 %v668_v42 }
0x1234   :  { %v1104_v43 = vpop.eup %1103 }
0x1235   :  { %v670_v44 = vsub.f32 %v574_v24, %v1104_v43 }
0x1237   :  { %672 = vrot.lane.b32.xlu1 %v670_v44, %s1122_s25 }
0x12a9   :  { %v673_v45 = vpop.permute.xlu1 %672 }
0x12aa   :  { %v675_v46 = vmul.f32 %v1102_v37, %v673_v45  ;;  %v155_v37 = vunpack.c.0.s8 %v154_v2 }
0x12ac   :  { %677 = vrot.lane.b32.xlu0 %v675_v46, %s1121_s22  ;;  %v158_v38 = vsub.s32 %v155_v37, %v1186_v10 }
0x12ae   :  { %v159_v41 = vrot.slane %v1205_v39, %v158_v38  ;;  %v583_v45 = vrot.slane %v1284_v25, %v158_v38  ;;  %v477_v25 = vrot.slane %v1265_v57, %v158_v38 }
0x12b0   :  { %v166_v44 = vrot.slane %v159_v41, %v158_v38 }
0x131e   :  { %v678_v47 = vpop.permute.xlu0 %677 }
0x131f   :  { %v680_v48 = vadd.f32 %v1104_v43, %v678_v47  ;;  %v371_v43 = vrot.slane %v1245_v31, %v158_v38 }
0x1321   :  { %v1303_v49 = vpack.c.bf16 %v680_v48, %v680_v48  ;;  %v378_v46 = vrot.slane %v371_v43, %v158_v38 }
0x1323   :  { %705 = vrot.lane.b32.xlu1 %v1303_v49, %s1119_s21 }
0x1395   :  { %v706_v50 = vpop.permute.xlu1 %705 }
0x1396   :  { %1049 = vmatmul.mubr.msk.bf16.vlgmr.msra.gmra.mrb[12].mxu0 %vm44_vm2, %v706_v50  ;;  %v265_v50 = vrot.slane %v1225_v3, %v158_v38  ;;  %v484_v3 = vrot.slane %v477_v25, %v158_v38 }
0x1469   :  { %v744_v51 = vpop.f32.mrb[12].mxu0 }
0x146a   :  { %v757_v52 = vadd.f32 %v744_v51, %v1188_v11  ;;  %v1050_v53 = vpop.f32.mrb[13].mxu0  ;;  %v750_v60 = vadd.f32 %v744_v51, %v704_v59 }
0x146b   :  { %v747_v54 = vpop.f32.mrb[14].mxu0 }
0x146c   :  { %v765_v55 = vrot.slane %v757_v52, %v1191_v12  ;;  %v1051_v56 = vpop.f32.mrb[15].mxu0  ;;  %v966_v61 = vmul.f32 -1.442695, %v750_v60  ;;  %v272_v52 = vrot.slane %v265_v50, %v158_v38  ;;  %v689_v54 = vrot.slane %v1303_v49, %v158_v38 }
0x146e   :  { %766 = vrot.lane.b32.xlu0 %v765_v55, %s1119_s21  ;;  %1105 = vpow2.f32 %v966_v61  ;;  %v696_v55 = vrot.slane %v689_v54, %v158_v38 }
0x1478   :  { %v1106_v62 = vpop.eup %1105 }
0x1479   :  { %v754_v63 = vadd.f32 1.0, %v1106_v62 }
0x147b   :  { %1107 = vrcp.f32 %v754_v63 }
0x1485   :  { %v1108_v4 = vpop.eup %1107 }
0x14e0   :  { %v767_v5 = vpop.permute.xlu0 %766 }
0x14e1   :  { %v769_v6 = vmul.f32 %v1108_v4, %v767_v5 }
0x14e3   :  { %771 = vrot.lane.b32.xlu1 %v769_v6, %s1119_s21 }
0x1555   :  { %v772_v7 = vpop.permute.xlu1 %771 }
0x1556   :  { %v774_v8 = vadd.f32 %v772_v7, %v704_v59 }
0x1558   :  { %1109 = vtanh.f32 %v774_v8 }
0x1562   :  { %v1110_v9 = vpop.eup %1109 }
0x1563   :  { %v776_v13 = vsub.f32 %v680_v48, %v1110_v9  ;;  %v590_v48 = vrot.slane %v583_v45, %v158_v38 }
0x1565   :  { %778 = vrot.lane.b32.xlu0 %v776_v13, %s1122_s25 }
0x15d7   :  { %v779_v14 = vpop.permute.xlu0 %778 }
0x15d8   :  { %v781_v15 = vmul.f32 %v1108_v4, %v779_v14 }
0x15da   :  { %783 = vrot.lane.b32.xlu1 %v781_v15, %s1121_s22 }
0x164c   :  { %v784_v16 = vpop.permute.xlu1 %783 }
0x164d   :  { %v786_v17 = vadd.f32 %v1110_v9, %v784_v16 }
0x164f   :  { %v787_v18 = vpack.c.bf16 %v786_v17, %v786_v17 }
0x1651   :  { %811 = vrot.lane.b32.xlu0 %v787_v18, %s1119_s21  ;;  %v795_v47 = vrot.slane %v787_v18, %v158_v38 }
0x1653   :  { %v802_v10 = vrot.slane %v795_v47, %v158_v38 }
0x16c3   :  { %v812_v19 = vpop.permute.xlu0 %811 }
0x16c4   :  { %1057 = vmatmul.mubr.msk.bf16.vlgmr.msra.gmra.mrb[12].mxu1 %vm44_vm2, %v812_v19 }
0x1797   :  { %v850_v20 = vpop.f32.mrb[12].mxu1 }
0x1798   :  { %v863_v21 = vadd.f32 %v850_v20, %v1188_v11  ;;  %v1058_v22 = vpop.f32.mrb[13].mxu1  ;;  %v856_v29 = vadd.f32 %v850_v20, %v810_v28 }
0x1799   :  { %v853_v23 = vpop.f32.mrb[14].mxu1 }
0x179a   :  { %v871_v24 = vrot.slane %v863_v21, %v1191_v12  ;;  %v1059_v26 = vpop.f32.mrb[15].mxu1  ;;  %v970_v30 = vmul.f32 -1.442695, %v856_v29 }
0x179c   :  { %872 = vrot.lane.b32.xlu1 %v871_v24, %s1119_s21  ;;  %1111 = vpow2.f32 %v970_v30 }
0x17a6   :  { %v1112_v32 = vpop.eup %1111 }
0x17a7   :  { %v860_v33 = vadd.f32 1.0, %v1112_v32 }
0x17a9   :  { %1113 = vrcp.f32 %v860_v33 }
0x17b3   :  { %v1114_v1 = vpop.eup %1113 }
0x180e   :  { %v873_v11 = vpop.permute.xlu1 %872 }
0x180f   :  { %v875_v34 = vmul.f32 %v1114_v1, %v873_v11 }
0x1811   :  { %877 = vrot.lane.b32.xlu0 %v875_v34, %s1119_s21 }
0x1883   :  { %v878_v35 = vpop.permute.xlu0 %877 }
0x1884   :  { %v880_v36 = vadd.f32 %v878_v35, %v810_v28 }
0x1886   :  { %1115 = vtanh.f32 %v880_v36 }
0x1890   :  { %v1116_v40 = vpop.eup %1115 }
0x1891   :  { %v882_v42 = vsub.f32 %v786_v17, %v1116_v40 }
0x1893   :  { %884 = vrot.lane.b32.xlu1 %v882_v42, %s1122_s25 }
0x1897   :  { %167 = vrot.lane.b32.xlu1 %v166_v44, %s1119_s21 }
0x189b   :  { %379 = vrot.lane.b32.xlu1 %v378_v46, %s1119_s21 }
0x189f   :  { %591 = vrot.lane.b32.xlu1 %v590_v48, %s1119_s21 }
0x18a3   :  { %803 = vrot.lane.b32.xlu1 %v802_v10, %s1119_s21 }
0x1905   :  { %v885_v39 = vpop.permute.xlu1 %884 }
0x1906   :  { %v887_v51 = vmul.f32 %v1114_v1, %v885_v39 }
0x1908   :  { %889 = vrot.lane.b32.xlu0 %v887_v51, %s1121_s22 }
0x1909   :  { %v168_v31 = vpop.permute.xlu1 %167 }
0x190a   :  { %171 = vst.msk [vmem:[%s1385_s3] sm:$0x1] %vm170_vm3, %v168_v31 }
0x190c   :  { %273 = vrot.lane.b32.xlu0 %v272_v52, %s1119_s21 }
0x190d   :  { %v380_v53 = vpop.permute.xlu1 %379 }
0x190e   :  { %951 = vst.msk [vmem:[%s1385_s3 + $0x2] sm:$0x1] %vm170_vm3, %v380_v53 }
0x1910   :  { %485 = vrot.lane.b32.xlu0 %v484_v3, %s1119_s21 }
0x1911   :  { %v592_v57 = vpop.permute.xlu1 %591 }
0x1912   :  { %959 = vst.msk [vmem:[%s1385_s3 + $0x4] sm:$0x1] %vm170_vm3, %v592_v57 }
0x1914   :  { %697 = vrot.lane.b32.xlu0 %v696_v55, %s1119_s21 }
0x1915   :  { %v804_v56 = vpop.permute.xlu1 %803 }
0x1916   :  { %967 = vst.msk [vmem:[%s1385_s3 + $0x6] sm:$0x1] %vm170_vm3, %v804_v56 }
0x197a   :  { %v890_v49 = vpop.permute.xlu0 %889 }
0x197b   :  { %v892_v58 = vadd.f32 %v1116_v40, %v890_v49 }
0x197d   :  { %v893_v59 = vpack.c.bf16 %v892_v58, %v892_v58  ;;  %v921_v60 = vrot.slane %v892_v58, %v1191_v12 }
0x197e   :  { %v274_v61 = vpop.permute.xlu0 %273 }
0x197f   :  { %v901_v62 = vrot.slane %v893_v59, %v158_v38  ;;  %947 = vst.msk [vmem:[%s1385_s3 + $0x1] sm:$0x1] %vm170_vm3, %v274_v61  ;;  %922 = vrot.lane.b32.xlu1 %v921_v60, %s1119_s21 }
0x1981   :  { %v908_v63 = vrot.slane %v901_v62, %v158_v38 }
0x1982   :  { %v486_v4 = vpop.permute.xlu0 %485 }
0x1983   :  { %955 = vst.msk [vmem:[%s1385_s3 + $0x3] sm:$0x1] %vm170_vm3, %v486_v4  ;;  %909 = vrot.lane.b32.xlu0 %v908_v63, %s1119_s21 }
0x1986   :  { %v698_v5 = vpop.permute.xlu0 %697 }
0x1987   :  { %963 = vst.msk [vmem:[%s1385_s3 + $0x5] sm:$0x1] %vm170_vm3, %v698_v5 }
0x19f1   :  { %v923_v12 = vpop.permute.xlu1 %922 }
0x19f2   :  { %926 = vst.msk [vmem:[#allocation2] sm:$0x3] %vm21_vm0, %v923_v12  ;;  %930 = vst.msk [vmem:[%s1386_s4] sm:$0x3] %vm21_vm0, %v923_v12 }
0x19f5   :  { %v910_v6 = vpop.permute.xlu0 %909 }
0x19f6   :  { %971 = vst.msk [vmem:[%s1385_s3 + $0x7] sm:$0x1] %vm170_vm3, %v910_v6 }

</bundles_post_ra>
